<compile_context>
chip_gen: v5e
topology: v5e:2x2
jax: 0.10.0
libtpu: 0.0.40
codegen_flags: <defaults>
</compile_context>

<pallas_src>
import jax
import jax.numpy as jnp
from jax import lax
from jax.experimental import pallas as pl
from jax.experimental.pallas import tpu as pltpu

EPS = 1e-5   # PyTorch BatchNorm1d default eps
LANE = 128


def _round_up(x, m):
    return (x + m - 1) // m * m


def _bn_train(h, gamma, beta):
    """BatchNorm1d training-mode normalization (stats over all rows), one pass.

    h: (rows, C) f32.  gamma/beta: (1, C) f32.  Padded channels are all-zero,
    which stays exactly zero through this normalization (gamma/beta padded 0).
    """
    cnt = h.shape[0]
    s1 = jnp.sum(h, axis=0, keepdims=True)
    s2 = jnp.sum(h * h, axis=0, keepdims=True)
    mean = s1 * (1.0 / cnt)
    var = s2 * (1.0 / cnt) - mean * mean          # biased variance (PyTorch norm)
    inv = lax.rsqrt(var + EPS)                    # EUP
    return (h - mean) * (inv * gamma) + beta


def _make_kernel(n, l_out, c_in_p, c_out_p, stride, has_downsample):
    rows = n * l_out

    def kernel(x_ref, w1_ref, w2_ref, g1_ref, b1_ref, g2_ref, b2_ref, *rest):
        if has_downsample:
            wd_ref, gd_ref, bd_ref, out_ref, hpad_ref = rest
        else:
            out_ref, hpad_ref = rest

        # ---- conv1: kernel=3, stride=stride, padding=1  -> one K=3*C_in matmul ----
        if stride == 1:
            xp = x_ref[...]                                     # (N, L_in+2, Cin_p) bf16
            taps = [xp[:, k:k + l_out, :] for k in range(3)]    # shifted views
            x_taps = jnp.concatenate(taps, axis=-1)             # (N, L_out, 3*Cin_p)
            x_mid = taps[1]                                     # original x (identity/ds input)
        else:
            # strided taps were pre-gathered in the wrapper
            x_taps = x_ref[...]                                 # (N, L_out, 3*Cin_p) bf16
            x_mid = x_taps[:, :, c_in_p:2 * c_in_p]             # x[:, ::stride, :]

        h1 = jnp.dot(x_taps.reshape(rows, 3 * c_in_p), w1_ref[...],
                     preferred_element_type=jnp.float32)        # (rows, Cout_p) f32

        # ---- bn1 + relu (f32) ----
        h1 = jnp.maximum(_bn_train(h1, g1_ref[...], b1_ref[...]), 0.0)

        # ---- conv2: kernel=3, stride=1, padding=1 via zero-padded VMEM scratch ----
        hpad_ref[...] = jnp.zeros_like(hpad_ref)                # zero rows = conv padding
        hpad_ref[:, 1:l_out + 1, :] = h1.reshape(n, l_out, c_out_p)
        hp = hpad_ref[...]
        h_taps = jnp.concatenate([hp[:, k:k + l_out, :] for k in range(3)], axis=-1)
        h2 = jnp.dot(h_taps.reshape(rows, 3 * c_out_p).astype(jnp.bfloat16),
                     w2_ref[...], preferred_element_type=jnp.float32)

        # ---- bn2 ----
        h2 = _bn_train(h2, g2_ref[...], b2_ref[...])

        # ---- shortcut ----
        if has_downsample:
            d = jnp.dot(x_mid.reshape(rows, c_in_p), wd_ref[...],
                        preferred_element_type=jnp.float32)
            d = _bn_train(d, gd_ref[...], bd_ref[...])
        else:
            d = x_mid.reshape(rows, c_in_p).astype(jnp.float32)  # identity (Cin_p == Cout_p)

        # ---- residual add + relu; lane-dense (Cout_p = multiple of 128) store ----
        out_ref[...] = jnp.maximum(h2 + d, 0.0).reshape(n, l_out, c_out_p)

    return kernel


def residual_block_forward(x, params, stride):
    """x: (N, C_in, L) float32 (PyTorch NCL).  Returns (N, C_out, L_out) float32."""
    n, c_in, l_in = x.shape
    w1 = params["w1"]                               # (C_out, C_in, 3)
    c_out = w1.shape[0]
    l_out = (l_in - 1) // stride + 1                # conv(k=3, pad=1) output length
    has_downsample = (stride != 1) or (c_in != c_out)

    c_in_p = _round_up(c_in, LANE)
    c_out_p = _round_up(c_out, LANE)

    # ---- layout plumbing: NCL -> (N, L, C), pad channels to 128 lanes, zero-pad L ----
    x_nlc = jnp.transpose(x, (0, 2, 1)).astype(jnp.float32)
    x_nlc = jnp.pad(x_nlc, ((0, 0), (0, 0), (0, c_in_p - c_in)))
    x_pad = jnp.pad(x_nlc, ((0, 0), (1, 1), (0, 0))).astype(jnp.bfloat16)  # conv padding=1

    if stride == 1:
        x_pre = x_pad                                            # taps built in-kernel
    else:
        # pre-gather the 3 strided tap views (im2col) so the kernel has no strided loads
        span = stride * (l_out - 1) + 1
        taps = [x_pad[:, k:k + span:stride, :] for k in range(3)]
        x_pre = jnp.concatenate(taps, axis=-1)                   # (N, L_out, 3*Cin_p)

    def prep_w3(w, cin, cin_p):                                  # (C_out, C_in, 3) -> (3*Cin_p, Cout_p)
        wk = jnp.transpose(w, (2, 1, 0)).astype(jnp.float32)     # (3, C_in, C_out)
        wk = jnp.pad(wk, ((0, 0), (0, cin_p - cin), (0, c_out_p - c_out)))
        return wk.reshape(3 * cin_p, c_out_p).astype(jnp.bfloat16)

    def prep_vec(v):
        return jnp.pad(v.astype(jnp.float32), (0, c_out_p - c_out)).reshape(1, c_out_p)

    w1f = prep_w3(w1, c_in, c_in_p)
    w2f = prep_w3(params["w2"], c_out, c_out_p)

    inputs = [x_pre, w1f, w2f,
              prep_vec(params["g1"]), prep_vec(params["b1"]),
              prep_vec(params["g2"]), prep_vec(params["b2"])]
    if has_downsample:
        wd = jnp.transpose(params["wd"][:, :, 0], (1, 0)).astype(jnp.float32)   # (C_in, C_out)
        wd = jnp.pad(wd, ((0, c_in_p - c_in), (0, c_out_p - c_out))).astype(jnp.bfloat16)
        inputs += [wd, prep_vec(params["gd"]), prep_vec(params["bd"])]

    kernel = _make_kernel(n, l_out, c_in_p, c_out_p, stride, has_downsample)
    vmem_spec = pl.BlockSpec(memory_space=pltpu.MemorySpace.VMEM)

    out = pl.pallas_call(
        kernel,
        out_shape=jax.ShapeDtypeStruct((n, l_out, c_out_p), jnp.float32),
        in_specs=[vmem_spec] * len(inputs),
        out_specs=vmem_spec,
        scratch_shapes=[pltpu.VMEM((n, l_out + 2, c_out_p), jnp.float32)],
    )(*inputs)

    # strip channel padding, back to NCL
    return out[:, :, :c_out].transpose(0, 2, 1)


# ---------------- pure-JAX reference (mirrors the PyTorch forward, f32) ----------------
def _ref_forward(x, params, stride):
    def conv(h, w, s, p):
        return lax.conv_general_dilated(h, w, (s,), [(p, p)],
                                        dimension_numbers=("NCH", "OIH", "NCH"))

    def bn(h, g, b):
        mean = jnp.mean(h, axis=(0, 2), keepdims=True)
        var = jnp.mean((h - mean) ** 2, axis=(0, 2), keepdims=True)
        return (h - mean) / jnp.sqrt(var + EPS) * g[None, :, None] + b[None, :, None]

    c_out = params["w1"].shape[0]
    has_ds = (stride != 1) or (x.shape[1] != c_out)
    h = jax.nn.relu(bn(conv(x, params["w1"], stride, 1), params["g1"], params["b1"]))
    h = bn(conv(h, params["w2"], 1, 1), params["g2"], params["b2"])
    d = bn(conv(x, params["wd"], stride, 0), params["gd"], params["bd"]) if has_ds else x
    return jax.nn.relu(h + d)


def _make_params(key, c_in, c_out):
    ks = jax.random.split(key, 9)
    return {
        "w1": 0.3 * jax.random.normal(ks[0], (c_out, c_in, 3), jnp.float32),
        "w2": 0.3 * jax.random.normal(ks[1], (c_out, c_out, 3), jnp.float32),
        "wd": 0.3 * jax.random.normal(ks[2], (c_out, c_in, 1), jnp.float32),
        "g1": 1.0 + 0.1 * jax.random.normal(ks[3], (c_out,), jnp.float32),
        "b1": 0.1 * jax.random.normal(ks[4], (c_out,), jnp.float32),
        "g2": 1.0 + 0.1 * jax.random.normal(ks[5], (c_out,), jnp.float32),
        "b2": 0.1 * jax.random.normal(ks[6], (c_out,), jnp.float32),
        "gd": 1.0 + 0.1 * jax.random.normal(ks[7], (c_out,), jnp.float32),
        "bd": 0.1 * jax.random.normal(ks[8], (c_out,), jnp.float32),
    }


if __name__ == "__main__":
    key = jax.random.PRNGKey(0)
    k_p1, k_p2, k_x1, k_x2 = jax.random.split(key, 4)

    # Tolerance is relaxed vs. pure-f32 because matmul operands run in bf16
    # (f32 accumulation); BN/ReLU/residual math is f32.
    ATOL = RTOL = 5e-2

    # Config 1: stride=2, C_in != C_out  -> conv1x1 + BN downsample path.
    N, C_IN, C_OUT, L, STRIDE = 2, 4, 8, 16, 2
    params1 = _make_params(k_p1, C_IN, C_OUT)
    x1 = jax.random.normal(k_x1, (N, C_IN, L), jnp.float32)
    out1 = residual_block_forward(x1, params1, STRIDE)
    jax.block_until_ready(out1)
    ref1 = _ref_forward(x1, params1, STRIDE)
    assert out1.shape == ref1.shape == (N, C_OUT, L // 2)
    assert jnp.allclose(out1, ref1, atol=ATOL, rtol=RTOL), \
        f"max abs err {jnp.max(jnp.abs(out1 - ref1))}"

    # Config 2: stride=1, C_in == C_out  -> identity shortcut path.
    params2 = _make_params(k_p2, C_OUT, C_OUT)
    x2 = jax.random.normal(k_x2, (N, C_OUT, L), jnp.float32)
    out2 = residual_block_forward(x2, params2, 1)
    jax.block_until_ready(out2)
    ref2 = _ref_forward(x2, params2, 1)
    assert out2.shape == ref2.shape == (N, C_OUT, L)
    assert jnp.allclose(out2, ref2, atol=ATOL, rtol=RTOL), \
        f"max abs err {jnp.max(jnp.abs(out2 - ref2))}"

    print("KERNEL_OK")
</pallas_src>

<mosaic_0001>
module attributes {stable_mosaic.version = 11 : i64} {
  func.func @kernel(%arg0: memref<2x8x384xbf16, #tpu.memory_space<vmem>>, %arg1: memref<384x128xbf16, #tpu.memory_space<vmem>>, %arg2: memref<384x128xbf16, #tpu.memory_space<vmem>>, %arg3: memref<1x128xf32, #tpu.memory_space<vmem>>, %arg4: memref<1x128xf32, #tpu.memory_space<vmem>>, %arg5: memref<1x128xf32, #tpu.memory_space<vmem>>, %arg6: memref<1x128xf32, #tpu.memory_space<vmem>>, %arg7: memref<128x128xbf16, #tpu.memory_space<vmem>>, %arg8: memref<1x128xf32, #tpu.memory_space<vmem>>, %arg9: memref<1x128xf32, #tpu.memory_space<vmem>>, %arg10: memref<2x8x128xf32, #tpu.memory_space<vmem>>, %arg11: memref<2x10x128xf32, #tpu.memory_space<vmem>>) attributes {dimension_semantics = [], scalar_prefetch = 0 : i64, scratch_operands = 1 : i64, tpu.core_type = #tpu.core_type<tc>} {
    %c0 = arith.constant 0 : index
    %c0_0 = arith.constant 0 : index
    %c0_1 = arith.constant 0 : index
    %0 = vector.load %arg0[%c0, %c0_0, %c0_1] : memref<2x8x384xbf16, #tpu.memory_space<vmem>>, vector<2x8x384xbf16>
    %1 = vector.extract_strided_slice %0 {offsets = [0, 0, 128], sizes = [2, 8, 128], strides = [1, 1, 1]} : vector<2x8x384xbf16> to vector<2x8x128xbf16>
    %2 = vector.shape_cast %0 : vector<2x8x384xbf16> to vector<16x384xbf16>
    %c0_2 = arith.constant 0 : index
    %c0_3 = arith.constant 0 : index
    %3 = vector.load %arg1[%c0_2, %c0_3] : memref<384x128xbf16, #tpu.memory_space<vmem>>, vector<384x128xbf16>
    %cst = arith.constant dense<0.000000e+00> : vector<16x128xf32>
    %4 = tpu.matmul %2, %3, %cst {dimension_numbers = #tpu.dot_dimension_numbers<[1], [0], [0], [1], [0, 0, 1, 1], [], []>} : vector<16x384xbf16>, vector<384x128xbf16>, vector<16x128xf32> -> vector<16x128xf32>
    %c0_4 = arith.constant 0 : index
    %c0_5 = arith.constant 0 : index
    %5 = vector.load %arg3[%c0_4, %c0_5] : memref<1x128xf32, #tpu.memory_space<vmem>>, vector<1x128xf32>
    %c0_6 = arith.constant 0 : index
    %c0_7 = arith.constant 0 : index
    %6 = vector.load %arg4[%c0_6, %c0_7] : memref<1x128xf32, #tpu.memory_space<vmem>>, vector<1x128xf32>
    %cst_8 = arith.constant dense<0.000000e+00> : vector<128xf32>
    %7 = vector.multi_reduction <add>, %4, %cst_8 [0] : vector<16x128xf32> to vector<128xf32>
    %8 = vector.shape_cast %7 : vector<128xf32> to vector<1x128xf32>
    %9 = arith.mulf %4, %4 : vector<16x128xf32>
    %cst_9 = arith.constant dense<0.000000e+00> : vector<128xf32>
    %10 = vector.multi_reduction <add>, %9, %cst_9 [0] : vector<16x128xf32> to vector<128xf32>
    %11 = vector.shape_cast %10 : vector<128xf32> to vector<1x128xf32>
    %cst_10 = arith.constant 6.250000e-02 : f32
    %12 = vector.broadcast %cst_10 : f32 to vector<1x128xf32>
    %13 = arith.mulf %8, %12 : vector<1x128xf32>
    %cst_11 = arith.constant 6.250000e-02 : f32
    %14 = vector.broadcast %cst_11 : f32 to vector<1x128xf32>
    %15 = arith.mulf %11, %14 : vector<1x128xf32>
    %16 = arith.mulf %13, %13 : vector<1x128xf32>
    %17 = arith.subf %15, %16 : vector<1x128xf32>
    %cst_12 = arith.constant 9.99999974E-6 : f32
    %18 = vector.broadcast %cst_12 : f32 to vector<1x128xf32>
    %19 = arith.addf %17, %18 : vector<1x128xf32>
    %20 = math.rsqrt %19 : vector<1x128xf32>
    %21 = vector.broadcast %13 : vector<1x128xf32> to vector<16x128xf32>
    %22 = arith.subf %4, %21 : vector<16x128xf32>
    %23 = arith.mulf %20, %5 : vector<1x128xf32>
    %24 = vector.broadcast %23 : vector<1x128xf32> to vector<16x128xf32>
    %25 = arith.mulf %22, %24 : vector<16x128xf32>
    %26 = vector.broadcast %6 : vector<1x128xf32> to vector<16x128xf32>
    %27 = arith.addf %25, %26 : vector<16x128xf32>
    %cst_13 = arith.constant 0.000000e+00 : f32
    %28 = vector.broadcast %cst_13 : f32 to vector<16x128xf32>
    %29 = arith.maximumf %27, %28 : vector<16x128xf32>
    %cst_14 = arith.constant 0.000000e+00 : f32
    %30 = vector.broadcast %cst_14 : f32 to vector<2x10x128xf32>
    %c0_15 = arith.constant 0 : index
    %c0_16 = arith.constant 0 : index
    %c0_17 = arith.constant 0 : index
    %31 = vector.load %arg11[%c0_15, %c0_16, %c0_17] : memref<2x10x128xf32, #tpu.memory_space<vmem>>, vector<2x10x128xf32>
    tpu.vector_store %arg11[%c0_15, %c0_16, %c0_17], %30 {strides = array<i32>} : memref<2x10x128xf32, #tpu.memory_space<vmem>>, vector<2x10x128xf32>,
    %32 = vector.shape_cast %29 : vector<16x128xf32> to vector<2x8x128xf32>
    %c0_18 = arith.constant 0 : index
    %c1 = arith.constant 1 : index
    %c0_19 = arith.constant 0 : index
    %33 = vector.load %arg11[%c0_18, %c1, %c0_19] : memref<2x10x128xf32, #tpu.memory_space<vmem>>, vector<2x8x128xf32>
    tpu.vector_store %arg11[%c0_18, %c1, %c0_19], %32 {strides = array<i32>} : memref<2x10x128xf32, #tpu.memory_space<vmem>>, vector<2x8x128xf32>,
    %c0_20 = arith.constant 0 : index
    %c0_21 = arith.constant 0 : index
    %c0_22 = arith.constant 0 : index
    %34 = vector.load %arg11[%c0_20, %c0_21, %c0_22] : memref<2x10x128xf32, #tpu.memory_space<vmem>>, vector<2x10x128xf32>
    %35 = vector.extract_strided_slice %34 {offsets = [0, 0, 0], sizes = [2, 8, 128], strides = [1, 1, 1]} : vector<2x10x128xf32> to vector<2x8x128xf32>
    %36 = vector.extract_strided_slice %34 {offsets = [0, 1, 0], sizes = [2, 8, 128], strides = [1, 1, 1]} : vector<2x10x128xf32> to vector<2x8x128xf32>
    %37 = vector.extract_strided_slice %34 {offsets = [0, 2, 0], sizes = [2, 8, 128], strides = [1, 1, 1]} : vector<2x10x128xf32> to vector<2x8x128xf32>
    %38 = tpu.concatenate %35, %36, %37 in 2 : vector<2x8x128xf32>, vector<2x8x128xf32>, vector<2x8x128xf32> -> vector<2x8x384xf32>
    %39 = vector.shape_cast %38 : vector<2x8x384xf32> to vector<16x384xf32>
    %40 = arith.truncf %39 : vector<16x384xf32> to vector<16x384xbf16>
    %c0_23 = arith.constant 0 : index
    %c0_24 = arith.constant 0 : index
    %41 = vector.load %arg2[%c0_23, %c0_24] : memref<384x128xbf16, #tpu.memory_space<vmem>>, vector<384x128xbf16>
    %cst_25 = arith.constant dense<0.000000e+00> : vector<16x128xf32>
    %42 = tpu.matmul %40, %41, %cst_25 {dimension_numbers = #tpu.dot_dimension_numbers<[1], [0], [0], [1], [0, 0, 1, 1], [], []>} : vector<16x384xbf16>, vector<384x128xbf16>, vector<16x128xf32> -> vector<16x128xf32>
    %c0_26 = arith.constant 0 : index
    %c0_27 = arith.constant 0 : index
    %43 = vector.load %arg5[%c0_26, %c0_27] : memref<1x128xf32, #tpu.memory_space<vmem>>, vector<1x128xf32>
    %c0_28 = arith.constant 0 : index
    %c0_29 = arith.constant 0 : index
    %44 = vector.load %arg6[%c0_28, %c0_29] : memref<1x128xf32, #tpu.memory_space<vmem>>, vector<1x128xf32>
    %cst_30 = arith.constant dense<0.000000e+00> : vector<128xf32>
    %45 = vector.multi_reduction <add>, %42, %cst_30 [0] : vector<16x128xf32> to vector<128xf32>
    %46 = vector.shape_cast %45 : vector<128xf32> to vector<1x128xf32>
    %47 = arith.mulf %42, %42 : vector<16x128xf32>
    %cst_31 = arith.constant dense<0.000000e+00> : vector<128xf32>
    %48 = vector.multi_reduction <add>, %47, %cst_31 [0] : vector<16x128xf32> to vector<128xf32>
    %49 = vector.shape_cast %48 : vector<128xf32> to vector<1x128xf32>
    %cst_32 = arith.constant 6.250000e-02 : f32
    %50 = vector.broadcast %cst_32 : f32 to vector<1x128xf32>
    %51 = arith.mulf %46, %50 : vector<1x128xf32>
    %cst_33 = arith.constant 6.250000e-02 : f32
    %52 = vector.broadcast %cst_33 : f32 to vector<1x128xf32>
    %53 = arith.mulf %49, %52 : vector<1x128xf32>
    %54 = arith.mulf %51, %51 : vector<1x128xf32>
    %55 = arith.subf %53, %54 : vector<1x128xf32>
    %cst_34 = arith.constant 9.99999974E-6 : f32
    %56 = vector.broadcast %cst_34 : f32 to vector<1x128xf32>
    %57 = arith.addf %55, %56 : vector<1x128xf32>
    %58 = math.rsqrt %57 : vector<1x128xf32>
    %59 = vector.broadcast %51 : vector<1x128xf32> to vector<16x128xf32>
    %60 = arith.subf %42, %59 : vector<16x128xf32>
    %61 = arith.mulf %58, %43 : vector<1x128xf32>
    %62 = vector.broadcast %61 : vector<1x128xf32> to vector<16x128xf32>
    %63 = arith.mulf %60, %62 : vector<16x128xf32>
    %64 = vector.broadcast %44 : vector<1x128xf32> to vector<16x128xf32>
    %65 = arith.addf %63, %64 : vector<16x128xf32>
    %66 = vector.shape_cast %1 : vector<2x8x128xbf16> to vector<16x128xbf16>
    %c0_35 = arith.constant 0 : index
    %c0_36 = arith.constant 0 : index
    %67 = vector.load %arg7[%c0_35, %c0_36] : memref<128x128xbf16, #tpu.memory_space<vmem>>, vector<128x128xbf16>
    %cst_37 = arith.constant dense<0.000000e+00> : vector<16x128xf32>
    %68 = tpu.matmul %66, %67, %cst_37 {dimension_numbers = #tpu.dot_dimension_numbers<[1], [0], [0], [1], [0, 0, 1, 1], [], []>} : vector<16x128xbf16>, vector<128x128xbf16>, vector<16x128xf32> -> vector<16x128xf32>
    %c0_38 = arith.constant 0 : index
    %c0_39 = arith.constant 0 : index
    %69 = vector.load %arg8[%c0_38, %c0_39] : memref<1x128xf32, #tpu.memory_space<vmem>>, vector<1x128xf32>
    %c0_40 = arith.constant 0 : index
    %c0_41 = arith.constant 0 : index
    %70 = vector.load %arg9[%c0_40, %c0_41] : memref<1x128xf32, #tpu.memory_space<vmem>>, vector<1x128xf32>
    %cst_42 = arith.constant dense<0.000000e+00> : vector<128xf32>
    %71 = vector.multi_reduction <add>, %68, %cst_42 [0] : vector<16x128xf32> to vector<128xf32>
    %72 = vector.shape_cast %71 : vector<128xf32> to vector<1x128xf32>
    %73 = arith.mulf %68, %68 : vector<16x128xf32>
    %cst_43 = arith.constant dense<0.000000e+00> : vector<128xf32>
    %74 = vector.multi_reduction <add>, %73, %cst_43 [0] : vector<16x128xf32> to vector<128xf32>
    %75 = vector.shape_cast %74 : vector<128xf32> to vector<1x128xf32>
    %cst_44 = arith.constant 6.250000e-02 : f32
    %76 = vector.broadcast %cst_44 : f32 to vector<1x128xf32>
    %77 = arith.mulf %72, %76 : vector<1x128xf32>
    %cst_45 = arith.constant 6.250000e-02 : f32
    %78 = vector.broadcast %cst_45 : f32 to vector<1x128xf32>
    %79 = arith.mulf %75, %78 : vector<1x128xf32>
    %80 = arith.mulf %77, %77 : vector<1x128xf32>
    %81 = arith.subf %79, %80 : vector<1x128xf32>
    %cst_46 = arith.constant 9.99999974E-6 : f32
    %82 = vector.broadcast %cst_46 : f32 to vector<1x128xf32>
    %83 = arith.addf %81, %82 : vector<1x128xf32>
    %84 = math.rsqrt %83 : vector<1x128xf32>
    %85 = vector.broadcast %77 : vector<1x128xf32> to vector<16x128xf32>
    %86 = arith.subf %68, %85 : vector<16x128xf32>
    %87 = arith.mulf %84, %69 : vector<1x128xf32>
    %88 = vector.broadcast %87 : vector<1x128xf32> to vector<16x128xf32>
    %89 = arith.mulf %86, %88 : vector<16x128xf32>
    %90 = vector.broadcast %70 : vector<1x128xf32> to vector<16x128xf32>
    %91 = arith.addf %89, %90 : vector<16x128xf32>
    %92 = arith.addf %65, %91 : vector<16x128xf32>
    %cst_47 = arith.constant 0.000000e+00 : f32
    %93 = vector.broadcast %cst_47 : f32 to vector<16x128xf32>
    %94 = arith.maximumf %92, %93 : vector<16x128xf32>
    %95 = vector.shape_cast %94 : vector<16x128xf32> to vector<2x8x128xf32>
    %c0_48 = arith.constant 0 : index
    %c0_49 = arith.constant 0 : index
    %c0_50 = arith.constant 0 : index
    %96 = vector.load %arg10[%c0_48, %c0_49, %c0_50] : memref<2x8x128xf32, #tpu.memory_space<vmem>>, vector<2x8x128xf32>
    tpu.vector_store %arg10[%c0_48, %c0_49, %c0_50], %95 {strides = array<i32>} : memref<2x8x128xf32, #tpu.memory_space<vmem>>, vector<2x8x128xf32>,
    return
  }
}

</mosaic_0001>

<bundles_post_ra>
// kernel: tpu_custom_call.1
= control target key start
LH: loop header
LB: loop body
LE: loop exit
PB: predicated region body
PF: predicated region fallthrough
CT: control target
= control target key end

     0   :  { %15 = vsyncpa [#allocation4], 0  ;;  %s1449_s0 = inlined_call_operand.hbm [shape: bf16[2,8,384], index: 0, kind: input, shape index: {}]   ;;  %s1450_s1 = inlined_call_operand.hbm [shape: bf16[384,128], index: 1, kind: input, shape index: {}]   ;;  %s1451_s2 = inlined_call_operand.hbm [shape: bf16[384,128], index: 2, kind: input, shape index: {}]   ;;  %s1452_s3 = inlined_call_operand.vmem [shape: f32[1,128], index: 3, kind: input, shape index: {}]   ;;  %s1453_s4 = inlined_call_operand.vmem [shape: f32[1,128], index: 4, kind: input, shape index: {}]   ;;  %s1454_s5 = inlined_call_operand.vmem [shape: f32[1,128], index: 5, kind: input, shape index: {}]   ;;  %s1455_s6 = inlined_call_operand.vmem [shape: f32[1,128], index: 6, kind: input, shape index: {}]   ;;  %s1456_s7 = inlined_call_operand.hbm [shape: bf16[128,128], index: 7, kind: input, shape index: {}]   ;;  %s1457_s8 = inlined_call_operand.vmem [shape: f32[1,128], index: 8, kind: input, shape index: {}]   ;;  %s1458_s9 = inlined_call_operand.vmem [shape: f32[1,128], index: 9, kind: input, shape index: {}]   ;;  %s1459_s10 = inlined_call_operand.hbm [shape: f32[2,8,128], index: 10, kind: output, shape index: {}]  }
   0x1   :  { %16 = vsyncpa [#allocation7], 0 }
   0x2   :  { %17 = vsyncpa [#allocation10], 0  ;;  %s36_s15 = sshll.u32 %s1450_s1, 4  ;;  %s37_s15 = int_to_ptr.hbm [resolvable:$true] %s36_s15 }
   0x3   :  { %18 = vsyncpa [#allocation5], 0  ;;  %s1311_s16 = smov [#allocation6]   ;;  %s23_s20 = sshll.u32 %s1449_s0, 4  ;;  %s24_s20 = int_to_ptr.hbm [resolvable:$true] %s23_s20 }
   0x4   :  { %s38_s17 = sshll.u32 %s1311_s16, 4  ;;  %s1312_s21 = smov 64   ;;  %s39_s17 = int_to_ptr.vmem [resolvable:$true] %s38_s17 }
   0x5   :  { %s1313_s22 = smov 4   ;;  %s1314_s23 = smov [#allocation3]  }
   0x6   :  { %44 = dma.hbm_to_vmem [thread:$0]  %s37_s15, 3072, %s39_s17, [#allocation7], %s1312_s21, %s1312_s21, %s1313_s22  }
   0x7   :  { %s25_s24 = sshll.u32 %s1314_s23, 4  ;;  %s1315_s25 = smov 192   ;;  %s26_s24 = int_to_ptr.vmem [resolvable:$true] %s25_s24 }
   0x8   :  { %s1316_s26 = smov 12   ;;  %s49_s28 = sshll.u32 %s1451_s2, 4  ;;  %s50_s28 = int_to_ptr.hbm [resolvable:$true] %s49_s28 }
   0x9   :  { %31 = dma.hbm_to_vmem [thread:$0]  %s24_s20, 384, %s26_s24, [#allocation4], %s1315_s25, %s1315_s25, %s1316_s26  }
   0xa   :  { %s1317_s29 = smov [#allocation8]   ;;  %s70_s12 = sshll.u32 %s1456_s7, 4  ;;  %s71_s12 = int_to_ptr.hbm [resolvable:$true] %s70_s12 }
   0xb   :  { %s51_s30 = sshll.u32 %s1317_s29, 4  ;;  %s1318_s13 = smov [#allocation9]   ;;  %s52_s30 = int_to_ptr.vmem [resolvable:$true] %s51_s30 }
   0xc   :  { %57 = dma.hbm_to_vmem [thread:$0]  %s50_s28, 3072, %s52_s30, [#allocation7], %s1312_s21, %s1312_s21, %s1313_s22  }
   0xd   :  { %s72_s14 = sshll.u32 %s1318_s13, 4  ;;  %s73_s14 = int_to_ptr.vmem [resolvable:$true] %s72_s14 }
   0xe   :  { %78 = dma.hbm_to_vmem [thread:$0]  %s71_s12, 1024, %s73_s14, [#allocation10], %s1312_s21, %s1312_s21, %s1313_s22  }
   0xf   :  { %1303 = dma.done.wait [#allocation4], 384  }
  0x10   :  { %1304 = vsyncadd [#allocation4], 4294966912 }
  0x11   :  { %1305 = dma.done.wait [#allocation7], 6144  }
  0x12   :  { %1306 = vsyncadd [#allocation7], 4294961152 }
  0x13   :  { %1307 = dma.done.wait [#allocation10], 1024  }
  0x14   :  { %1308 = vsyncadd [#allocation10], 4294966272  ;;  %v1113_v0 = vld [vmem:[#allocation6 + $0x38] sm:$0xff]  ;;  %v1112_v3 = vld [vmem:[#allocation6 + $0x30] sm:$0xff]  ;;  %vm413_vm3 = vcmask 1046528   ;;  %vm422_vm4 = vcmask 1045504  }
  0x15   :  { %v1121_v1 = vld [vmem:[#allocation6 + $0x78] sm:$0xff]  ;;  %311 = vmatpush.bf16.msra.mxu0 %v1113_v0  ;;  %v1120_v4 = vld [vmem:[#allocation6 + $0x70] sm:$0xff]  ;;  %v1111_v6 = vld [vmem:[#allocation6 + $0x28] sm:$0xff]  ;;  %s1320_s21 = smov [#allocation11]   ;;  %s1322_s25 = smov 8  }
  0x16   :  { %v1129_v2 = vld [vmem:[#allocation6 + $0xb8] sm:$0xff]  ;;  %325 = vmatpush.bf16.msra.mxu1 %v1121_v1  ;;  %v1128_v5 = vld [vmem:[#allocation6 + $0xb0] sm:$0xff]  ;;  %v1119_v7 = vld [vmem:[#allocation6 + $0x68] sm:$0xff]  ;;  %s850_s22 = sshll.u32 %s1320_s21, 4  ;;  %s851_s22 = int_to_ptr.vmem [resolvable:$true] %s850_s22 }
  0x17   :  { %339 = vmatpush.bf16.msra.mxu2 %v1129_v2  ;;  %v1127_v8 = vld [vmem:[#allocation6 + $0xa8] sm:$0xff]  ;;  %v1110_v9 = vld [vmem:[#allocation6 + $0x20] sm:$0xff]  ;;  %v1109_v12 = vld [vmem:[#allocation6 + $0x18] sm:$0xff] }
  0x18   :  { %v1118_v10 = vld [vmem:[#allocation6 + $0x60] sm:$0xff]  ;;  %v1117_v13 = vld [vmem:[#allocation6 + $0x58] sm:$0xff]  ;;  %v1108_v15 = vld [vmem:[#allocation6 + $0x10] sm:$0xff] }
  0x19   :  { %312 = vmatpush.bf16.msra.mxu0 %v1112_v3  ;;  %v1126_v11 = vld [vmem:[#allocation6 + $0xa0] sm:$0xff]  ;;  %v1125_v14 = vld [vmem:[#allocation6 + $0x98] sm:$0xff]  ;;  %v1116_v16 = vld [vmem:[#allocation6 + $0x50] sm:$0xff] }
  0x1a   :  { %326 = vmatpush.bf16.msra.mxu1 %v1120_v4  ;;  %v1124_v17 = vld [vmem:[#allocation6 + $0x90] sm:$0xff]  ;;  %v1107_v18 = vld [vmem:[#allocation6 + $0x8] sm:$0xff]  ;;  %v1106_v21 = vld [vmem:[#allocation6] sm:$0xff] }
  0x1b   :  { %340 = vmatpush.bf16.msra.mxu2 %v1128_v5  ;;  %v1115_v19 = vld [vmem:[#allocation6 + $0x48] sm:$0xff]  ;;  %v1114_v22 = vld [vmem:[#allocation6 + $0x40] sm:$0xff]  ;;  %v1104_v24 = vld [vmem:[#allocation3 + $0x8] sm:$0xf0] }
  0x1c   :  { %v1123_v20 = vld [vmem:[#allocation6 + $0x88] sm:$0xff]  ;;  %v871_v26 = vld [vmem:[#allocation3 + $0xc] sm:$0xf0]  ;;  %v1122_v27 = vld [vmem:[#allocation6 + $0x80] sm:$0xff] }
  0x1d   :  { %313 = vmatpush.bf16.msra.mxu0 %v1111_v6  ;;  %v869_v23 = vld [vmem:[#allocation3] sm:$0xf]  ;;  %v1103_v25 = vld [vmem:[#allocation3 + $0x4] sm:$0xf]  ;;  %v877_v28 = vld [vmem:[#allocation3 + $0x8] sm:$0xf] }
  0x1e   :  { %327 = vmatpush.bf16.msra.mxu1 %v1119_v7  ;;  %v1105_v29 = vld [vmem:[#allocation3 + $0x10] sm:$0xf0]  ;;  %v870_v30 = vor.u32 %v1104_v24, %v869_v23  ;;  %v874_v31 = vor.u32 %v1103_v25, %v871_v26  ;;  %v1160_v34 = vld [vmem:[#allocation9 + $0x30] sm:$0xff]  ;;  %v1159_v35 = vld [vmem:[#allocation9 + $0x28] sm:$0xff] }
  0x1f   :  { %341 = vmatpush.bf16.msra.mxu2 %v1127_v8  ;;  %v878_v32 = vor.u32 %v1105_v29, %v877_v28  ;;  %v1161_v33 = vld [vmem:[#allocation9 + $0x38] sm:$0xff]  ;;  %v1158_v36 = vld [vmem:[#allocation9 + $0x20] sm:$0xff]  ;;  %v1156_v38 = vld [vmem:[#allocation9 + $0x10] sm:$0xff] }
  0x20   :  { %v1157_v37 = vld [vmem:[#allocation9 + $0x18] sm:$0xff]  ;;  %v1155_v39 = vld [vmem:[#allocation9 + $0x8] sm:$0xff]  ;;  %v1154_v44 = vld [vmem:[#allocation9] sm:$0xff] }
  0x21   :  { %314 = vmatpush.bf16.msra.mxu0 %v1110_v9  ;;  %v99_v40 = vld [vmem:[#allocation3] sm:$0xff]  ;;  %v101_v41 = vld [vmem:[#allocation3 + $0xc] sm:$0xff] }
  0x22   :  { %328 = vmatpush.bf16.msra.mxu1 %v1118_v10  ;;  %v712_v42 = vrot.slane %v99_v40, 4  ;;  %v713_v43 = vrot.slane %v101_v41, 4  ;;  %v1137_v56 = vld [vmem:[#allocation8 + $0x38] sm:$0xff]  ;;  %v1136_v0 = vld [vmem:[#allocation8 + $0x30] sm:$0xff]  ;;  %v1135_v7 = vld [vmem:[#allocation8 + $0x28] sm:$0xff] }
  0x23   :  { %342 = vmatpush.bf16.msra.mxu2 %v1126_v11  ;;  %626 = vmatpush.bf16.msra.mxu3 %v1137_v56  ;;  %v1145_v59 = vld [vmem:[#allocation8 + $0x78] sm:$0xff]  ;;  %v1144_v3 = vld [vmem:[#allocation8 + $0x70] sm:$0xff]  ;;  %v1143_v10 = vld [vmem:[#allocation8 + $0x68] sm:$0xff] }
  0x24   :  { %v730_v45 = vunpack.c.l.b16 %v712_v42  ;;  %v731_v46 = vunpack.c.l.b16 %v713_v43  ;;  %v1153_v60 = vld [vmem:[#allocation8 + $0xb8] sm:$0xff]  ;;  %v1152_v4 = vld [vmem:[#allocation8 + $0xb0] sm:$0xff]  ;;  %v1151_v11 = vld [vmem:[#allocation8 + $0xa8] sm:$0xff] }
  0x25   :  { %315 = vmatpush.bf16.msra.mxu0 %v1109_v12  ;;  %v1141_v24 = vld [vmem:[#allocation8 + $0x58] sm:$0xff]  ;;  %v1132_v28 = vld [vmem:[#allocation8 + $0x10] sm:$0xff] }
  0x26   :  { %329 = vmatpush.bf16.msra.mxu1 %v1117_v13  ;;  %v732_v47 = vpack.c.b16 %v731_v46, %v730_v45  ;;  %v1149_v25 = vld [vmem:[#allocation8 + $0x98] sm:$0xff]  ;;  %v353_v45 = vld [vmem:[%s1452_s3] sm:$0x1] }
  0x27   :  { %343 = vmatpush.bf16.msra.mxu2 %v1125_v14  ;;  %627 = vmatpush.bf16.msra.mxu3 %v1136_v0  ;;  %v1134_v14 = vld [vmem:[#allocation8 + $0x20] sm:$0xff] }
  0x29   :  { %316 = vmatpush.bf16.msra.mxu0 %v1108_v15 }
  0x2a   :  { %330 = vmatpush.bf16.msra.mxu1 %v1116_v16 }
  0x2b   :  { %344 = vmatpush.bf16.msra.mxu2 %v1124_v17  ;;  %628 = vmatpush.bf16.msra.mxu3 %v1135_v7  ;;  %v1142_v17 = vld [vmem:[#allocation8 + $0x60] sm:$0xff] }
  0x2d   :  { %317 = vmatpush.bf16.msra.mxu0 %v1107_v18  ;;  %v1150_v18 = vld [vmem:[#allocation8 + $0xa0] sm:$0xff] }
  0x2e   :  { %331 = vmatpush.bf16.msra.mxu1 %v1115_v19 }
  0x2f   :  { %345 = vmatpush.bf16.msra.mxu2 %v1123_v20  ;;  %629 = vmatpush.bf16.msra.mxu3 %v1134_v14 }
  0x31   :  { %318 = vmatpush.bf16.msra.mxu0 %v1106_v21  ;;  %v1133_v21 = vld [vmem:[#allocation8 + $0x18] sm:$0xff] }
  0x32   :  { %332 = vmatpush.bf16.msra.mxu1 %v1114_v22 }
  0x33   :  { %346 = vmatpush.bf16.msra.mxu2 %v1122_v27  ;;  %630 = vmatpush.bf16.msra.mxu3 %v1133_v21 }
  0x34   :  { %319 = vmatmul.bf16.vlgmr.msra.gmra.mxu0 %v870_v30  ;;  %v1319_v30 = vmov 0.0  }
  0x35   :  { %333 = vmatmul.bf16.vlgmr.msra.gmra.mxu1 %v874_v31  ;;  %640 = vmatpush.bf16.msrb.mxu0 %v1145_v59  ;;  %399 = vst [vmem:[#allocation2] sm:$0xff] %v1319_v30  ;;  %v1140_v31 = vld [vmem:[#allocation8 + $0x50] sm:$0xff] }
  0x36   :  { %347 = vmatmul.bf16.vlgmr.msra.gmra.mxu2 %v878_v32  ;;  %654 = vmatpush.bf16.msrb.mxu1 %v1153_v60  ;;  %400 = vst [vmem:[#allocation2 + $0x8] sm:$0x3] %v1319_v30  ;;  %v1148_v32 = vld [vmem:[#allocation8 + $0x90] sm:$0xff] }
  0x37   :  { %782 = vmatpush.bf16.msrb.mxu2 %v1161_v33  ;;  %631 = vmatpush.bf16.msra.mxu3 %v1132_v28  ;;  %v1131_v33 = vld [vmem:[#allocation8 + $0x8] sm:$0xff]  ;;  %401 = vst [vmem:[#allocation2 + $0x10] sm:$0xff] %v1319_v30 }
  0x38   :  { %402 = vst [vmem:[#allocation2 + $0x18] sm:$0x3] %v1319_v30 }
  0x39   :  { %641 = vmatpush.bf16.msrb.mxu0 %v1144_v3 }
  0x3a   :  { %655 = vmatpush.bf16.msrb.mxu1 %v1152_v4 }
  0x3b   :  { %783 = vmatpush.bf16.msrb.mxu2 %v1160_v34  ;;  %632 = vmatpush.bf16.msra.mxu3 %v1131_v33 }
  0x3d   :  { %642 = vmatpush.bf16.msrb.mxu0 %v1143_v10 }
  0x3e   :  { %656 = vmatpush.bf16.msrb.mxu1 %v1151_v11 }
  0x3f   :  { %784 = vmatpush.bf16.msrb.mxu2 %v1159_v35  ;;  %v1139_v35 = vld [vmem:[#allocation8 + $0x48] sm:$0xff] }
  0x41   :  { %643 = vmatpush.bf16.msrb.mxu0 %v1142_v17 }
  0x42   :  { %657 = vmatpush.bf16.msrb.mxu1 %v1150_v18 }
  0x43   :  { %785 = vmatpush.bf16.msrb.mxu2 %v1158_v36  ;;  %v1147_v36 = vld [vmem:[#allocation8 + $0x88] sm:$0xff] }
  0x45   :  { %644 = vmatpush.bf16.msrb.mxu0 %v1141_v24 }
  0x46   :  { %658 = vmatpush.bf16.msrb.mxu1 %v1149_v25 }
  0x47   :  { %786 = vmatpush.bf16.msrb.mxu2 %v1157_v37  ;;  %v1130_v37 = vld [vmem:[#allocation8] sm:$0xff] }
  0x48   :  { %633 = vmatpush.bf16.msra.mxu3 %v1130_v37 }
  0x49   :  { %645 = vmatpush.bf16.msrb.mxu0 %v1140_v31 }
  0x4a   :  { %659 = vmatpush.bf16.msrb.mxu1 %v1148_v32 }
  0x4b   :  { %787 = vmatpush.bf16.msrb.mxu2 %v1156_v38  ;;  %v1138_v38 = vld [vmem:[#allocation8 + $0x40] sm:$0xff] }
  0x4d   :  { %646 = vmatpush.bf16.msrb.mxu0 %v1139_v35 }
  0x4e   :  { %660 = vmatpush.bf16.msrb.mxu1 %v1147_v36 }
  0x4f   :  { %788 = vmatpush.bf16.msrb.mxu2 %v1155_v39  ;;  %v1146_v39 = vld [vmem:[#allocation8 + $0x80] sm:$0xff] }
  0x51   :  { %647 = vmatpush.bf16.msrb.mxu0 %v1138_v38 }
  0x52   :  { %661 = vmatpush.bf16.msrb.mxu1 %v1146_v39 }
  0x53   :  { %789 = vmatpush.bf16.msrb.mxu2 %v1154_v44 }
  0x56   :  { %790 = vmatmul.bf16.vlgmr.msrb.gmra.mxu2 %v732_v47 }
  0xb1   :  { %v320_v48 = vpop.f32.mrf.mxu0 }
  0xb2   :  { %v334_v49 = vpop.f32.mrf.mxu1 }
  0xb3   :  { %v335_v51 = vadd.f32 %v334_v49, %v320_v48 }
  0xb9   :  { %v348_v50 = vpop.f32.mrf.mxu2  ;;  %v322_v52 = vpop.f32.mrf.mxu0 }
  0xba   :  { %v336_v53 = vpop.f32.mrf.mxu1  ;;  %v1390_v54 = vadd.f32 %v348_v50, %v335_v51 }
  0xbb   :  { %v337_v55 = vadd.f32 %v336_v53, %v322_v52  ;;  %v1174_v52 = vld [vmem:[%s1453_s4] ss:$0 sm:$0xff] }
  0xbc   :  { %v362_v61 = vmul.f32 %v1390_v54, %v1390_v54 }
  0xc1   :  { %v350_v57 = vpop.f32.mrf.mxu2 }
  0xc2   :  { %v1392_v58 = vadd.f32 %v350_v57, %v337_v55 }
  0xc4   :  { %v355_v62 = vadd.f32 %v1392_v58, %v1390_v54  ;;  %v363_v63 = vmul.f32 %v1392_v58, %v1392_v58 }
  0xc6   :  { %v356_v1 = vrot.slane %v355_v62, 4  ;;  %v364_v2 = vadd.f32 %v363_v63, %v362_v61 }
  0xc8   :  { %v357_v5 = vadd.f32 %v356_v1, %v355_v62  ;;  %v365_v6 = vrot.slane %v364_v2, 4 }
  0xca   :  { %v358_v8 = vrot.slane %v357_v5, 2  ;;  %v366_v9 = vadd.f32 %v365_v6, %v364_v2 }
  0xcc   :  { %v359_v12 = vadd.f32 %v358_v8, %v357_v5  ;;  %v367_v13 = vrot.slane %v366_v9, 2 }
  0xce   :  { %v360_v15 = vrot.slane %v359_v12, 1  ;;  %v368_v16 = vadd.f32 %v367_v13, %v366_v9 }
  0xd0   :  { %v361_v19 = vadd.f32 %v360_v15, %v359_v12  ;;  %v369_v20 = vrot.slane %v368_v16, 1 }
  0xd2   :  { %v370_v22 = vadd.f32 %v369_v20, %v368_v16  ;;  %v371_v23 = vmul.f32 0.0625, %v361_v19 }
  0xd4   :  { %v372_v26 = vmul.f32 0.0625, %v370_v22  ;;  %v373_v27 = vmul.f32 %v371_v23, %v371_v23  ;;  %v386_v49 = vsub.f32 %v1390_v54, %v371_v23  ;;  %v387_v50 = vsub.f32 %v1392_v58, %v371_v23 }
  0xd6   :  { %v374_v29 = vsub.f32 %v372_v26, %v373_v27 }
  0xd8   :  { %v375_v34 = vadd.f32 1e-05, %v374_v29 }
  0xd9   :  { %v1410_v14 = vpop.f32.mrf.mxu2 }
  0xda   :  { %1177 = vrsqrt.f32 %v375_v34  ;;  %vm382_vm1 = vweird.f32 %v375_v34  ;;  %v805_v16 = vmul.f32 %v1410_v14, %v1410_v14 }
  0xe0   :  { %v1178_v40 = vpop.eup %1177 }
  0xe1   :  { %v377_v41 = vmul.f32 %v1178_v40, %v375_v34  ;;  %vm383_vm0 = vweird.f32 %v1178_v40  ;;  %v1412_v15 = vpop.f32.mrf.mxu2 }
  0xe2   :  { %vm384_vm2 = vmor %vm382_vm1, %vm383_vm0  ;;  %v798_v17 = vadd.f32 %v1412_v15, %v1410_v14  ;;  %v806_v18 = vmul.f32 %v1412_v15, %v1412_v15 }
  0xe3   :  { %v378_v42 = vmul.f32 %v1178_v40, %v377_v41 }
  0xe4   :  { %v799_v19 = vrot.slane %v798_v17, 4  ;;  %v807_v20 = vadd.f32 %v806_v18, %v805_v16 }
  0xe5   :  { %v379_v43 = vmul.f32 0.5, %v378_v42 }
  0xe6   :  { %v800_v21 = vadd.f32 %v799_v19, %v798_v17  ;;  %v808_v22 = vrot.slane %v807_v20, 4 }
  0xe7   :  { %v380_v44 = vsub.f32 1.5, %v379_v43 }
  0xe8   :  { %v801_v23 = vrot.slane %v800_v21, 2  ;;  %v809_v24 = vadd.f32 %v808_v22, %v807_v20  ;;  %v668_v22 = vld [vmem:[%s1454_s5] sm:$0x1] }
  0xe9   :  { %v381_v46 = vmul.f32 %v1178_v40, %v380_v44 }
  0xea   :  { %v802_v25 = vadd.f32 %v801_v23, %v800_v21  ;;  %v810_v26 = vrot.slane %v809_v24, 2 }
  0xeb   :  { %v385_v47 = vsel %vm384_vm2, %v1178_v40, %v381_v46 }
  0xec   :  { %v388_v48 = vmul.f32 %v385_v47, %v353_v45  ;;  %v803_v27 = vrot.slane %v802_v25, 1  ;;  %v811_v28 = vadd.f32 %v810_v26, %v809_v24 }
  0xee   :  { %v389_v51 = vperm.slane %v388_v48, 0  ;;  %v804_v29 = vadd.f32 %v803_v27, %v802_v25  ;;  %v812_v30 = vrot.slane %v811_v28, 1 }
  0xf0   :  { %v390_v53 = vmul.f32 %v389_v51, %v386_v49  ;;  %v391_v55 = vmul.f32 %v389_v51, %v387_v50  ;;  %v813_v31 = vadd.f32 %v812_v30, %v811_v28  ;;  %v1420_v32 = vmul.f32 0.0625, %v804_v29  ;;  %v1175_v29 = vld [vmem:[%s1458_s9] ss:$0 sm:$0xff]  ;;  %s852_s9 = sshll.u32 %s1459_s10, 4  ;;  %s853_s9 = int_to_ptr.hbm [resolvable:$true] %s852_s9 }
  0xf2   :  { %v395_v56 = vadd.f32 %v1174_v52, %v390_v53  ;;  %v396_v57 = vadd.f32 %v1174_v52, %v391_v55  ;;  %v815_v36 = vmul.f32 0.0625, %v813_v31  ;;  %v816_v37 = vmul.f32 %v1420_v32, %v1420_v32 }
  0xf3   :  { %v829_v20 = vsub.f32 %v1410_v14, %v1420_v32  ;;  %v830_v24 = vsub.f32 %v1412_v15, %v1420_v32 }
  0xf4   :  { %v397_v59 = vmax.f32 %v395_v56, 0.0  ;;  %v398_v60 = vmax.f32 %v396_v57, 0.0  ;;  %v817_v39 = vsub.f32 %v815_v36, %v816_v37 }
  0xf6   :  { %403 = vst [vmem:[#allocation2 + $0x1] sm:$0xff] %v397_v59  ;;  %v818_v44 = vadd.f32 1e-05, %v817_v39 }
  0xf7   :  { %404 = vst [vmem:[#allocation2 + $0x11] sm:$0xff] %v398_v60 }
  0xf8   :  { %1179 = vrsqrt.f32 %v818_v44  ;;  %vm825_vm5 = vweird.f32 %v818_v44 }
  0xfd   :  { %v405_v61 = vld [vmem:[#allocation2] sm:$0xff]  ;;  %v406_v62 = vld [vmem:[#allocation2 + $0x8] sm:$0x3] }
  0xfe   :  { %v407_v54 = vld [vmem:[#allocation2 + $0x10] sm:$0xff]  ;;  %v414_v63 = vrot.slane %v405_v61, 1  ;;  %v423_v58 = vrot.slane %v405_v61, 2  ;;  %v408_v0 = vld [vmem:[#allocation2 + $0x18] sm:$0x3]  ;;  %v415_v1 = vrot.slane %v406_v62, 1  ;;  %v1180_v57 = vpop.eup %1179 }
  0xff   :  { %v417_v2 = vrot.slane %v407_v54, 1  ;;  %v426_v3 = vrot.slane %v407_v54, 2  ;;  %v431_v4 = vpack.c.bf16 %v407_v54, %v405_v61  ;;  %v418_v5 = vrot.slane %v408_v0, 1 }
 0x100   :  { %v416_v6 = vsel %vm413_vm3, %v414_v63, %v415_v1  ;;  %v424_v7 = vrot.slane %v406_v62, 2  ;;  %v427_v8 = vrot.slane %v408_v0, 2  ;;  %v820_v61 = vmul.f32 %v1180_v57, %v818_v44 }
 0x101   :  { %634 = vmatmul.bf16.vlgmr.msra.gmra.mxu3 %v431_v4  ;;  %v419_v9 = vsel %vm413_vm3, %v417_v2, %v418_v5  ;;  %vm826_vm6 = vweird.f32 %v1180_v57 }
 0x102   :  { %v432_v10 = vpack.c.bf16 %v419_v9, %v416_v6  ;;  %v425_v11 = vsel %vm422_vm4, %v423_v58, %v424_v7  ;;  %v428_v12 = vsel %vm422_vm4, %v426_v3, %v427_v8  ;;  %v821_v0 = vmul.f32 %v1180_v57, %v820_v61  ;;  %vm827_vm7 = vmor %vm825_vm5, %vm826_vm6 }
 0x103   :  { %v433_v13 = vpack.c.bf16 %v428_v12, %v425_v11  ;;  %v796_v12 = vld [vmem:[%s1457_s8] sm:$0x1] }
 0x104   :  { %648 = vmatmul.bf16.vlgmr.msrb.gmra.mxu0 %v432_v10  ;;  %v822_v5 = vmul.f32 0.5, %v821_v0 }
 0x105   :  { %662 = vmatmul.bf16.vlgmr.msrb.gmra.mxu1 %v433_v13 }
 0x106   :  { %v823_v8 = vsub.f32 1.5, %v822_v5 }
 0x108   :  { %v824_v9 = vmul.f32 %v1180_v57, %v823_v8 }
 0x10a   :  { %v828_v13 = vsel %vm827_vm7, %v1180_v57, %v824_v9 }
 0x10b   :  { %v831_v17 = vmul.f32 %v828_v13, %v796_v12 }
 0x10d   :  { %v832_v21 = vperm.slane %v831_v17, 0 }
 0x10f   :  { %v833_v27 = vmul.f32 %v832_v21, %v829_v20  ;;  %v834_v28 = vmul.f32 %v832_v21, %v830_v24 }
 0x111   :  { %v838_v15 = vadd.f32 %v1175_v29, %v833_v27  ;;  %v839_v32 = vadd.f32 %v1175_v29, %v834_v28 }
 0x181   :  { %v649_v33 = vpop.f32.mrf.mxu0 }
 0x182   :  { %v663_v34 = vpop.f32.mrf.mxu1 }
 0x184   :  { %v635_v35 = vpop.f32.mrf.mxu3 }
 0x185   :  { %v650_v38 = vadd.f32 %v649_v33, %v635_v35  ;;  %v1176_v33 = vld [vmem:[%s1455_s6] ss:$0 sm:$0xff]  ;;  %s1321_s6 = smov 128  }
 0x187   :  { %v1424_v42 = vadd.f32 %v663_v34, %v650_v38 }
 0x189   :  { %v651_v40 = vpop.f32.mrf.mxu0  ;;  %v677_v47 = vmul.f32 %v1424_v42, %v1424_v42 }
 0x18a   :  { %v665_v45 = vpop.f32.mrf.mxu1 }
 0x18c   :  { %v637_v41 = vpop.f32.mrf.mxu3 }
 0x18d   :  { %v652_v43 = vadd.f32 %v651_v40, %v637_v41 }
 0x18f   :  { %v666_v46 = vadd.f32 %v665_v45, %v652_v43 }
 0x191   :  { %v670_v48 = vadd.f32 %v666_v46, %v1424_v42  ;;  %v678_v49 = vmul.f32 %v666_v46, %v666_v46 }
 0x193   :  { %v671_v50 = vrot.slane %v670_v48, 4  ;;  %v679_v51 = vadd.f32 %v678_v49, %v677_v47 }
 0x195   :  { %v672_v52 = vadd.f32 %v671_v50, %v670_v48  ;;  %v680_v53 = vrot.slane %v679_v51, 4 }
 0x197   :  { %v673_v55 = vrot.slane %v672_v52, 2  ;;  %v681_v56 = vadd.f32 %v680_v53, %v679_v51 }
 0x199   :  { %v674_v59 = vadd.f32 %v673_v55, %v672_v52  ;;  %v682_v60 = vrot.slane %v681_v56, 2 }
 0x19b   :  { %v675_v62 = vrot.slane %v674_v59, 1  ;;  %v683_v54 = vadd.f32 %v682_v60, %v681_v56 }
 0x19d   :  { %v676_v63 = vadd.f32 %v675_v62, %v674_v59  ;;  %v684_v58 = vrot.slane %v683_v54, 1 }
 0x19f   :  { %v685_v1 = vadd.f32 %v684_v58, %v683_v54  ;;  %v686_v2 = vmul.f32 0.0625, %v676_v63 }
 0x1a1   :  { %v687_v3 = vmul.f32 0.0625, %v685_v1  ;;  %v688_v4 = vmul.f32 %v686_v2, %v686_v2  ;;  %v701_v14 = vsub.f32 %v1424_v42, %v686_v2  ;;  %v702_v30 = vsub.f32 %v666_v46, %v686_v2 }
 0x1a3   :  { %v689_v6 = vsub.f32 %v687_v3, %v688_v4 }
 0x1a5   :  { %v690_v7 = vadd.f32 1e-05, %v689_v6 }
 0x1a7   :  { %1181 = vrsqrt.f32 %v690_v7  ;;  %vm697_vm9 = vweird.f32 %v690_v7 }
 0x1ad   :  { %v1182_v10 = vpop.eup %1181 }
 0x1ae   :  { %v692_v11 = vmul.f32 %v1182_v10, %v690_v7  ;;  %vm698_vm8 = vweird.f32 %v1182_v10 }
 0x1af   :  { %vm699_vm10 = vmor %vm697_vm9, %vm698_vm8 }
 0x1b0   :  { %v693_v16 = vmul.f32 %v1182_v10, %v692_v11 }
 0x1b2   :  { %v694_v18 = vmul.f32 0.5, %v693_v16 }
 0x1b4   :  { %v695_v19 = vsub.f32 1.5, %v694_v18 }
 0x1b6   :  { %v696_v23 = vmul.f32 %v1182_v10, %v695_v19 }
 0x1b8   :  { %v700_v25 = vsel %vm699_vm10, %v1182_v10, %v696_v23 }
 0x1b9   :  { %v703_v26 = vmul.f32 %v700_v25, %v668_v22 }
 0x1bb   :  { %v704_v31 = vperm.slane %v703_v26, 0 }
 0x1bd   :  { %v705_v34 = vmul.f32 %v704_v31, %v701_v14  ;;  %v706_v35 = vmul.f32 %v704_v31, %v702_v30 }
 0x1bf   :  { %v710_v36 = vadd.f32 %v1176_v33, %v705_v34  ;;  %v711_v37 = vadd.f32 %v1176_v33, %v706_v35 }
 0x1c1   :  { %v841_v38 = vadd.f32 %v839_v32, %v711_v37  ;;  %v840_v39 = vadd.f32 %v838_v15, %v710_v36 }
 0x1c3   :  { %v843_v40 = vmax.f32 %v841_v38, 0.0  ;;  %v842_v41 = vmax.f32 %v840_v39, 0.0 }
 0x1c5   :  { %845 = vst [vmem:[#allocation11 + $0x8] sm:$0xff] %v843_v40 }
 0x1c6   :  { %844 = vst [vmem:[#allocation11] sm:$0xff] %v842_v41 }
 0x1c7   :  { %858 = dma.vmem_to_hbm [thread:$0]  %s851_s22, 256, %s853_s9, [#allocation5], %s1321_s6, %s1321_s6, %s1322_s25  }
 0x1c8   :  { %1309 = dma.done.wait [#allocation5], 256  }
 0x1c9   :  { %1310 = vsyncadd [#allocation5], 4294967040 }
 0x1ca   :  { %863 = vsyncpa [#allocation4], 1 }
 0x1cb   :  { %864 = vsyncpa [#allocation7], 1 }
 0x1cc   :  { %865 = vsyncpa [#allocation10], 1 }
 0x1cd   :  { %866 = vsyncpa [#allocation5], 1 }

</bundles_post_ra>
